<compile_context>
chip_gen: v6e
topology: v6e:2x2x1
jax: 0.10.0
libtpu: 0.0.40
codegen_flags: <defaults>
</compile_context>

<pallas_src>
import functools

import jax
import jax.numpy as jnp
from jax import lax
from jax.experimental import pallas as pl
from jax.experimental.pallas import tpu as pltpu


def _round_up(v, m):
    return (v + m - 1) // m * m


# ----------------------------------------------------------------------------
# Fused kernel: conv-as-GEMM (K = 9*C) + bias + ReLU  ->  1x1 proj GEMM + bias
# ----------------------------------------------------------------------------
def _hybrid_embed_kernel(lhs_ref, wb_ref, bb_ref, wp_ref, bp_ref, o_ref):
    # lhs_ref: (tile_m, 9*C)   bf16  im2col patch rows for this output tile
    # wb_ref:  (9*C, Fpad)     bf16  backbone 3x3 conv weight, (di, dj, c)-major
    # bb_ref:  (1, Fpad)       f32
    # wp_ref:  (Fpad, Epad)    bf16  1x1 projection weight
    # bp_ref:  (1, Epad)       f32
    # o_ref:   (tile_m, Epad)  lane-dense output tile
    feat = jnp.dot(lhs_ref[...], wb_ref[...],
                   preferred_element_type=jnp.float32)            # conv GEMM
    feat = jnp.maximum(feat + bb_ref[...], 0.0)                   # bias + ReLU (f32)
    out = jnp.dot(feat.astype(jnp.bfloat16), wp_ref[...],
                  preferred_element_type=jnp.float32)             # 1x1 proj GEMM
    o_ref[...] = (out + bp_ref[...]).astype(o_ref.dtype)


# ----------------------------------------------------------------------------
# HybridEmbed forward, Pallas-backed
# ----------------------------------------------------------------------------
def hybrid_embed_forward(x_nchw, params, patch_size=1, tile_m=256,
                         out_dtype=jnp.float32):
    """x_nchw: (B, in_chans, H, W) -> (B, num_patches, embed_dim)."""
    if patch_size != 1:
        # TODO(synk): patch_size > 1 needs a strided patch gather on the
        # feature map; only the 1x1-proj configuration is implemented.
        raise NotImplementedError("Pallas HybridEmbed only supports patch_size=1")

    B, C, H, W = x_nchw.shape
    assert H % 2 == 0 and W % 2 == 0, "even spatial dims expected for the s=2 conv"
    Ho, Wo = H // 2, W // 2
    M = Ho * Wo

    wb = params["backbone_w"]          # (Fd, C, 3, 3)  OIHW
    bb = params["backbone_b"]          # (Fd,)
    wp = params["proj_w"]              # (E, Fd, 1, 1)
    bp = params["proj_b"]              # (E,)
    Fd, E = wb.shape[0], wp.shape[0]
    Fpad, Epad = _round_up(Fd, 128), _round_up(E, 128)
    nine_c = 9 * C

    # --- tile_m / Mpad -------------------------------------------------------
    tile_m = _round_up(min(tile_m, M), 8)
    Mpad = _round_up(M, tile_m)
    m_tiles = Mpad // tile_m

    # --- wrapper im2col (small-C path): (B, M, 9*C) bf16, (di, dj, c)-major ---
    x_nhwc = jnp.transpose(x_nchw, (0, 2, 3, 1)).astype(jnp.bfloat16)  # (B,H,W,C)
    xp = jnp.pad(x_nhwc, ((0, 0), (1, 1), (1, 1), (0, 0)))             # conv pad=1
    taps = [xp[:, di:di + 2 * Ho:2, dj:dj + 2 * Wo:2, :]               # (B,Ho,Wo,C)
            for di in range(3) for dj in range(3)]
    lhs = jnp.stack(taps, axis=3).reshape(B, M, nine_c)                # (B,M,9C)
    if Mpad != M:
        lhs = jnp.pad(lhs, ((0, 0), (0, Mpad - M), (0, 0)))

    # --- weights: K=9C conv matrix + 1x1 proj matrix, zero-padded lane-dense --
    wb_mat = wb.transpose(2, 3, 1, 0).reshape(nine_c, Fd)              # (di,dj,c)-major
    wb_mat = jnp.pad(wb_mat, ((0, 0), (0, Fpad - Fd))).astype(jnp.bfloat16)
    bb_row = jnp.pad(bb, (0, Fpad - Fd)).reshape(1, Fpad).astype(jnp.float32)
    wp_mat = jnp.pad(wp.reshape(E, Fd).T,
                     ((0, Fpad - Fd), (0, Epad - E))).astype(jnp.bfloat16)
    bp_row = jnp.pad(bp, (0, Epad - E)).reshape(1, Epad).astype(jnp.float32)

    out_bytes = jnp.dtype(out_dtype).itemsize

    # --- cost / VMEM budget (honest layout: bf16 streams, lane-padded blocks) -
    flops = 2 * B * Mpad * nine_c * Fpad + 2 * B * Mpad * Fpad * Epad
    bytes_accessed = (lhs.size * 2 + wb_mat.size * 2 + wp_mat.size * 2
                      + bb_row.size * 4 + bp_row.size * 4
                      + B * Mpad * Epad * out_bytes)
    vmem_est = (2 * tile_m * _round_up(nine_c, 128) * 2        # lhs block (x2 bufs)
                + 2 * _round_up(nine_c, 8) * Fpad * 2          # wb
                + 2 * Fpad * Epad * 2                          # wp
                + 2 * 8 * (Fpad + Epad) * 4                    # biases
                + 2 * tile_m * Epad * out_bytes                # output block (x2)
                + tile_m * Fpad * 6 + tile_m * Epad * 4)       # in-kernel temps
    vmem_limit = int(min(max(2 * vmem_est, 32 * 1024 * 1024), 48 * 1024 * 1024))

    out_padded = pl.pallas_call(
        _hybrid_embed_kernel,
        out_shape=jax.ShapeDtypeStruct((B, Mpad, Epad), out_dtype),
        grid_spec=pltpu.PrefetchScalarGridSpec(
            num_scalar_prefetch=0,
            grid=(B, m_tiles),
            in_specs=[
                # streamed im2col rows for this (batch, row-tile)
                pl.BlockSpec((None, tile_m, nine_c), lambda b, m: (b, m, 0)),
                # weights / biases stay resident (constant index maps)
                pl.BlockSpec((nine_c, Fpad), lambda b, m: (0, 0)),
                pl.BlockSpec((1, Fpad), lambda b, m: (0, 0)),
                pl.BlockSpec((Fpad, Epad), lambda b, m: (0, 0)),
                pl.BlockSpec((1, Epad), lambda b, m: (0, 0)),
            ],
            out_specs=pl.BlockSpec((None, tile_m, Epad), lambda b, m: (b, m, 0)),
        ),
        compiler_params=pltpu.CompilerParams(
            dimension_semantics=("parallel", "parallel"),
            vmem_limit_bytes=vmem_limit,
        ),
        cost_estimate=pl.CostEstimate(
            flops=flops, transcendentals=0, bytes_accessed=bytes_accessed),
    )(lhs, wb_mat, bb_row, wp_mat, bp_row)

    # flatten(2).transpose(1, 2) in PyTorch == (B, Ho*Wo, E) here (pixel-major).
    # With a production embed_dim (multiple of 128) and M % tile_m == 0 this
    # slice is a no-op; at toy sizes it just drops the zero padding.
    return out_padded[:, :M, :E]


# ----------------------------------------------------------------------------
# Pure-JAX f32 reference (lax conv) for a correctness check
# ----------------------------------------------------------------------------
def hybrid_embed_reference(x_nchw, params):
    dn = ("NCHW", "OIHW", "NCHW")
    f = lax.conv_general_dilated(x_nchw, params["backbone_w"], (2, 2),
                                 ((1, 1), (1, 1)), dimension_numbers=dn)
    f = jnp.maximum(f + params["backbone_b"].reshape(1, -1, 1, 1), 0.0)
    p = lax.conv_general_dilated(f, params["proj_w"], (1, 1),
                                 ((0, 0), (0, 0)), dimension_numbers=dn)
    p = p + params["proj_b"].reshape(1, -1, 1, 1)
    B, E, Hh, Ww = p.shape
    return p.reshape(B, E, Hh * Ww).transpose(0, 2, 1)


if __name__ == "__main__":
    # Small shapes: batch=2, in_chans=4, img=16x16, feature_dim=8, embed_dim=32
    B, C, H, W = 2, 4, 16, 16
    feature_dim, embed_dim = 8, 32

    key = jax.random.PRNGKey(0)
    k_x, k_wb, k_bb, k_wp, k_bp = jax.random.split(key, 5)
    x = jax.random.normal(k_x, (B, C, H, W), dtype=jnp.float32)
    params = {
        "backbone_w": 0.1 * jax.random.normal(k_wb, (feature_dim, C, 3, 3), jnp.float32),
        "backbone_b": 0.1 * jax.random.normal(k_bb, (feature_dim,), jnp.float32),
        "proj_w": 0.1 * jax.random.normal(k_wp, (embed_dim, feature_dim, 1, 1), jnp.float32),
        "proj_b": 0.1 * jax.random.normal(k_bp, (embed_dim,), jnp.float32),
    }

    fwd = jax.jit(lambda xx, pp: hybrid_embed_forward(xx, pp))
    out = jax.block_until_ready(fwd(x, params))
    assert out.shape == (B, (H // 2) * (W // 2), embed_dim), out.shape

    ref = jax.block_until_ready(hybrid_embed_reference(x, params))
    # Tolerance loosened vs the f32 reference because MXU operands are bf16
    # (accumulation stays f32).
    assert jnp.allclose(out, ref, atol=2e-2, rtol=2e-2), \
        f"mismatch vs reference: max abs err {jnp.max(jnp.abs(out - ref))}"

    print("KERNEL_OK")
</pallas_src>

<mosaic_0001>
module attributes {stable_mosaic.version = 11 : i64} {
  func.func @_hybrid_embed_kernel(%arg0: i32, %arg1: i32, %arg2: memref<1x64x36xbf16, #tpu.memory_space<vmem>>, %arg3: memref<36x128xbf16, #tpu.memory_space<vmem>>, %arg4: memref<1x128xf32, #tpu.memory_space<vmem>>, %arg5: memref<128x128xbf16, #tpu.memory_space<vmem>>, %arg6: memref<1x128xf32, #tpu.memory_space<vmem>>, %arg7: memref<1x64x128xf32, #tpu.memory_space<vmem>>) attributes {dimension_semantics = [#tpu.dimension_semantics<parallel>, #tpu.dimension_semantics<parallel>], iteration_bounds = array<i64: 2, 1>, scalar_prefetch = 0 : i64, scratch_operands = 0 : i64, tpu.core_type = #tpu.core_type<tc>, window_params = [{transform_indices = @transform_0, window_bounds = array<i64: 1, 64, 36>}, {pipeline_mode = #tpu.pipeline_mode<synchronous>, transform_indices = @transform_1, window_bounds = array<i64: 36, 128>}, {pipeline_mode = #tpu.pipeline_mode<synchronous>, transform_indices = @transform_2, window_bounds = array<i64: 1, 128>}, {pipeline_mode = #tpu.pipeline_mode<synchronous>, transform_indices = @transform_3, window_bounds = array<i64: 128, 128>}, {pipeline_mode = #tpu.pipeline_mode<synchronous>, transform_indices = @transform_4, window_bounds = array<i64: 1, 128>}, {transform_indices = @transform_5, window_bounds = array<i64: 1, 64, 128>}]} {
    %c0 = arith.constant 0 : index
    %c0_0 = arith.constant 0 : index
    %c0_1 = arith.constant 0 : index
    %0 = vector.load %arg2[%c0, %c0_0, %c0_1] : memref<1x64x36xbf16, #tpu.memory_space<vmem>>, vector<1x64x36xbf16>
    %1 = vector.shape_cast %0 : vector<1x64x36xbf16> to vector<64x36xbf16>
    %c0_2 = arith.constant 0 : index
    %c0_3 = arith.constant 0 : index
    %2 = vector.load %arg3[%c0_2, %c0_3] : memref<36x128xbf16, #tpu.memory_space<vmem>>, vector<36x128xbf16>
    %cst = arith.constant dense<0.000000e+00> : vector<64x128xf32>
    %3 = tpu.matmul %1, %2, %cst {dimension_numbers = #tpu.dot_dimension_numbers<[1], [0], [0], [1], [0, 0, 1, 1], [], []>} : vector<64x36xbf16>, vector<36x128xbf16>, vector<64x128xf32> -> vector<64x128xf32>
    %c0_4 = arith.constant 0 : index
    %c0_5 = arith.constant 0 : index
    %4 = vector.load %arg4[%c0_4, %c0_5] : memref<1x128xf32, #tpu.memory_space<vmem>>, vector<1x128xf32>
    %5 = vector.broadcast %4 : vector<1x128xf32> to vector<64x128xf32>
    %6 = arith.addf %3, %5 : vector<64x128xf32>
    %cst_6 = arith.constant 0.000000e+00 : f32
    %7 = vector.broadcast %cst_6 : f32 to vector<64x128xf32>
    %8 = arith.maximumf %6, %7 : vector<64x128xf32>
    %9 = arith.truncf %8 : vector<64x128xf32> to vector<64x128xbf16>
    %c0_7 = arith.constant 0 : index
    %c0_8 = arith.constant 0 : index
    %10 = vector.load %arg5[%c0_7, %c0_8] : memref<128x128xbf16, #tpu.memory_space<vmem>>, vector<128x128xbf16>
    %cst_9 = arith.constant dense<0.000000e+00> : vector<64x128xf32>
    %11 = tpu.matmul %9, %10, %cst_9 {dimension_numbers = #tpu.dot_dimension_numbers<[1], [0], [0], [1], [0, 0, 1, 1], [], []>} : vector<64x128xbf16>, vector<128x128xbf16>, vector<64x128xf32> -> vector<64x128xf32>
    %c0_10 = arith.constant 0 : index
    %c0_11 = arith.constant 0 : index
    %12 = vector.load %arg6[%c0_10, %c0_11] : memref<1x128xf32, #tpu.memory_space<vmem>>, vector<1x128xf32>
    %13 = vector.broadcast %12 : vector<1x128xf32> to vector<64x128xf32>
    %14 = arith.addf %11, %13 : vector<64x128xf32>
    %c0_12 = arith.constant 0 : index
    %c0_13 = arith.constant 0 : index
    %c0_14 = arith.constant 0 : index
    %15 = vector.load %arg7[%c0_12, %c0_13, %c0_14] : memref<1x64x128xf32, #tpu.memory_space<vmem>>, vector<1x64x128xf32>
    %16 = vector.shape_cast %15 : vector<1x64x128xf32> to vector<64x128xf32>
    %17 = vector.shape_cast %14 : vector<64x128xf32> to vector<1x64x128xf32>
    tpu.vector_store %arg7[%c0_12, %c0_13, %c0_14], %17 {strides = array<i32>} : memref<1x64x128xf32, #tpu.memory_space<vmem>>, vector<1x64x128xf32>,
    return
  }
  func.func @transform_0(%arg0: i32, %arg1: i32) -> (i32, i32, i32) {
    %c0_i32 = arith.constant 0 : i32
    %c0_i32_0 = arith.constant 0 : i32
    return %arg0, %arg1, %c0_i32 : i32, i32, i32
  }
  func.func @transform_1(%arg0: i32, %arg1: i32) -> (i32, i32) {
    %c0_i32 = arith.constant 0 : i32
    %c0_i32_0 = arith.constant 0 : i32
    %c0_i32_1 = arith.constant 0 : i32
    return %c0_i32, %c0_i32_0 : i32, i32
  }
  func.func @transform_2(%arg0: i32, %arg1: i32) -> (i32, i32) {
    %c0_i32 = arith.constant 0 : i32
    %c0_i32_0 = arith.constant 0 : i32
    %c0_i32_1 = arith.constant 0 : i32
    return %c0_i32, %c0_i32_0 : i32, i32
  }
  func.func @transform_3(%arg0: i32, %arg1: i32) -> (i32, i32) {
    %c0_i32 = arith.constant 0 : i32
    %c0_i32_0 = arith.constant 0 : i32
    %c0_i32_1 = arith.constant 0 : i32
    return %c0_i32, %c0_i32_0 : i32, i32
  }
  func.func @transform_4(%arg0: i32, %arg1: i32) -> (i32, i32) {
    %c0_i32 = arith.constant 0 : i32
    %c0_i32_0 = arith.constant 0 : i32
    %c0_i32_1 = arith.constant 0 : i32
    return %c0_i32, %c0_i32_0 : i32, i32
  }
  func.func @transform_5(%arg0: i32, %arg1: i32) -> (i32, i32, i32) {
    %c0_i32 = arith.constant 0 : i32
    %c0_i32_0 = arith.constant 0 : i32
    return %arg0, %arg1, %c0_i32 : i32, i32, i32
  }
}

</mosaic_0001>

<bundles_post_ra>
// kernel: _lambda_.1
= control target key start
LH: loop header
LB: loop body
LE: loop exit
PB: predicated region body
PF: predicated region fallthrough
CT: control target
= control target key end

     0   :  { %s830_s18 = smov 0   ;;  %s832_s19 = smov 0   ;;  %s910_s0 = inlined_call_operand.vmem [shape: bf16[2,64,36], index: 0, kind: input, shape index: {}]   ;;  %s911_s1 = inlined_call_operand.vmem [shape: bf16[36,128], index: 1, kind: input, shape index: {}]   ;;  %s912_s2 = inlined_call_operand.vmem [shape: f32[1,128], index: 2, kind: input, shape index: {}]   ;;  %s913_s3 = inlined_call_operand.vmem [shape: bf16[128,128], index: 3, kind: input, shape index: {}]   ;;  %s914_s4 = inlined_call_operand.vmem [shape: f32[1,128], index: 4, kind: input, shape index: {}]   ;;  %s915_s5 = inlined_call_operand.vmem [shape: f32[2,64,128], index: 5, kind: output, shape index: {}]  }
   0x1   :  { %s834_s20 = smov 0  }
   0x2 LB: > { %s27_s21 = sadd.s32 1, %s794_s19  ;;  %p649_p0 = scmp.ge.s32.totalorder %s798_s20, 1  ;;  %s798_s20 = sphi %s834_s20, %s15_s20   ;;  %s794_s19 = sphi %s832_s19, %s917_s19   ;;  %s790_s18 = sphi %s830_s18, %s916_s18  }
   0x3   : > { %p29_p1 = scmp.ge.s32.totalorder %s27_s21, 2  ;;  %p208_p2 = scmp.lt.s32.totalorder %s798_s20, 3 }
   0x5   : > { %s919_s21 = smov (%p29_p1, %s27_s21), 0  ;;  %p209_p3 = pnand %p649_p0, %p208_p2 }
   0x6   : > { %p245_p4 = scmp.lt.s32.totalorder (!%p209_p3), %s790_s18, 1 }
   0x7   : > { %212 = sbr.rel (%p209_p3) target bundleno = 441 (0x1b9), region = 40 }
   0xc   : > { %v761_v0 = vld [vmem:[%s911_s1 + $0x10] ss:$0 sps:$4 sm:$0x33]   ;;  %vm333_vm0 = vcmask 1041408   ;;  %v762_v1 = vld [vmem:[%s911_s1 + $0x8] sm:$0xff]   ;;  %v763_v3 = vld [vmem:[%s911_s1] sm:$0xff]  }
   0xd   : > { %736 = vmatprep.subr.msk.bf16.mxu0 %vm333_vm0, %v761_v0  ;;  %v335_v2 = vsel %vm333_vm0, %v761_v0, 0  ;;  %s921_s18 = smov (!%p245_p4, %s790_s18), 1  ;;  %v768_v4 = vld [vmem:[%s913_s3 + $0x38] sm:$0xff]   ;;  %v769_v5 = vld [vmem:[%s913_s3 + $0x30] sm:$0xff]   ;;  %vm320_vm1 = vcmask 293888   ;;  %v770_v7 = vld [vmem:[%s913_s3 + $0x28] sm:$0xff]  }
   0xe   : > { %699 = vmatpush3.bf16.msra.mxu0 %v335_v2  ;;  %s677_s30 = sshll.u32 %s921_s18, 5  ;;  %712 = vmatprep.subr.bf16.mxu1 %v768_v4  ;;  %v771_v10 = vld [vmem:[%s913_s3 + $0x20] sm:$0xff]   ;;  %v772_v11 = vld [vmem:[%s913_s3 + $0x18] sm:$0xff]   ;;  %v773_v13 = vld [vmem:[%s913_s3 + $0x10] sm:$0xff]   ;;  %s678_s29 = sshll.u32 %s921_s18, 6 }
   0xf   : > { %700 = vmatprep.subr.bf16.mxu0 %v762_v1  ;;  %s252_s10 = scalar_lea.vmem %s910_s0, %s677_s30  ;;  %713 = vmatpush3.bf16.msra.mxu1 %v768_v4  ;;  %v774_v14 = vld [vmem:[%s913_s3 + $0x8] sm:$0xff]   ;;  %v775_v15 = vld [vmem:[%s913_s3] sm:$0xff]   ;;  %s262_s9 = scalar_lea.vmem %s915_s5, %s678_s29 }
  0x10   : > { %v764_v6 = vld [vmem:[%s252_s10] sm:$0xff]   ;;  %714 = vmatprep.subr.bf16.mxu1 %v769_v5  ;;  %v765_v8 = vld [vmem:[%s252_s10 + $0x8] sm:$0xff]   ;;  %v766_v9 = vld [vmem:[%s252_s10 + $0x10] sm:$0xff]  }
  0x11   : > { %704 = vmatprep.mubr.msk.bf16.mxu0 %vm320_vm1, %v764_v6  ;;  %v767_v12 = vld [vmem:[%s252_s10 + $0x18] sm:$0xff]   ;;  %v654_v18 = vld [vmem:[%s912_s2] ss:$0 sm:$0xff] }
  0x12   : > { %701 = vmatpush3.bf16.msra.mxu0 %v762_v1  ;;  %v666_v45 = vld [vmem:[%s914_s4] ss:$0 sm:$0xff] }
  0x13   : > { %702 = vmatprep.subr.bf16.mxu0 %v763_v3  ;;  %715 = vmatpush3.bf16.msra.mxu1 %v769_v5 }
  0x14   : > { %716 = vmatprep.subr.bf16.mxu1 %v770_v7 }
  0x16   : > { %703 = vmatpush3.bf16.msra.mxu0 %v763_v3 }
  0x17   : > { %717 = vmatpush3.bf16.msra.mxu1 %v770_v7 }
  0x18   : > { %718 = vmatprep.subr.bf16.mxu1 %v771_v10 }
  0x19   : > { %705 = vmatmul.mubr.msk.bf16.vlgmr.msra.gmra.mxu0 %vm320_vm1, %v765_v8 }
  0x1a   : > { %708 = vmatprep.mubr.msk.bf16.mxu0 %vm320_vm1, %v766_v9 }
  0x1b   : > { %719 = vmatpush3.bf16.msra.mxu1 %v771_v10 }
  0x1c   : > { %720 = vmatprep.subr.bf16.mxu1 %v772_v11 }
  0x1f   : > { %721 = vmatpush3.bf16.msra.mxu1 %v772_v11 }
  0x20   : > { %722 = vmatprep.subr.bf16.mxu1 %v773_v13 }
  0x21   : > { %709 = vmatmul.mubr.msk.bf16.gmra.mxu0 %vm320_vm1, %v767_v12 }
  0x23   : > { %723 = vmatpush3.bf16.msra.mxu1 %v773_v13 }
  0x24   : > { %724 = vmatprep.subr.bf16.mxu1 %v774_v14 }
  0x27   : > { %725 = vmatpush3.bf16.msra.mxu1 %v774_v14 }
  0x28   : > { %726 = vmatprep.subr.bf16.mxu1 %v775_v15 }
  0x2b   : > { %727 = vmatpush3.bf16.msra.mxu1 %v775_v15 }
  0xd9   : > { %v706_v16 = vpop.f32.mrf.mxu0 }
  0xda   : > { %v380_v22 = vadd.f32 %v706_v16, %v654_v18 }
  0xdb   : > { %v371_v17 = vpop.f32.mrf.mxu0 }
  0xdc   : > { %v372_v20 = vadd.f32 %v654_v18, %v371_v17  ;;  %v404_v29 = vmax.f32 %v380_v22, 0.0 }
  0xdd   : > { %v707_v19 = vpop.f32.mrf.mxu0 }
  0xde   : > { %v383_v21 = vadd.f32 %v707_v19, %v654_v18  ;;  %v402_v27 = vmax.f32 %v372_v20, 0.0 }
  0xdf   : > { %v374_v23 = vpop.f32.mrf.mxu0 }
  0xe0   : > { %v375_v24 = vadd.f32 %v654_v18, %v374_v23  ;;  %v405_v25 = vmax.f32 %v383_v21, 0.0 }
  0xe1   : > { %v710_v26 = vpop.f32.mrf.mxu0 }
  0xe2   : > { %v403_v28 = vmax.f32 %v375_v24, 0.0  ;;  %v411_v32 = vpack.c.bf16 %v405_v25, %v404_v29  ;;  %v396_v36 = vadd.f32 %v710_v26, %v654_v18 }
  0xe3   : > { %v387_v30 = vpop.f32.mrf.mxu0 }
  0xe4   : > { %v410_v31 = vpack.c.bf16 %v403_v28, %v402_v27  ;;  %v388_v34 = vadd.f32 %v654_v18, %v387_v30  ;;  %v408_v42 = vmax.f32 %v396_v36, 0.0 }
  0xe5   : > { %v711_v33 = vpop.f32.mrf.mxu0 }
  0xe6   : > { %v399_v35 = vadd.f32 %v711_v33, %v654_v18  ;;  %728 = vmatprep.mubr.bf16.mxu1 %v410_v31  ;;  %v406_v40 = vmax.f32 %v388_v34, 0.0 }
  0xe7   : > { %v390_v37 = vpop.f32.mrf.mxu0  ;;  %729 = vmatmul.mubr.bf16.vlgmr.msra.gmra.mxu1 %v411_v32 }
  0xe8   : > { %v391_v38 = vadd.f32 %v654_v18, %v390_v37  ;;  %v409_v39 = vmax.f32 %v399_v35, 0.0 }
  0xea   : > { %v407_v41 = vmax.f32 %v391_v38, 0.0  ;;  %v413_v44 = vpack.c.bf16 %v409_v39, %v408_v42 }
  0xec   : > { %v412_v43 = vpack.c.bf16 %v407_v41, %v406_v40 }
  0xee   : > { %732 = vmatprep.mubr.bf16.mxu1 %v412_v43 }
  0xef   : > { %733 = vmatmul.mubr.bf16.gmra.mxu1 %v413_v44 }
 0x1a7   : > { %v730_v46 = vpop.f32.mrf.mxu1 }
 0x1a8   : > { %v528_v47 = vadd.f32 %v730_v46, %v666_v45 }
 0x1a9   : > { %v519_v48 = vpop.f32.mrf.mxu1 }
 0x1aa   : > { %552 = vst [vmem:[%s262_s9 + $0x10] sm:$0xff] %v528_v47  ;;  %v520_v49 = vadd.f32 %v666_v45, %v519_v48 }
 0x1ab   : > { %v731_v50 = vpop.f32.mrf.mxu1 }
 0x1ac   : > { %550 = vst [vmem:[%s262_s9] sm:$0xff] %v520_v49  ;;  %v531_v51 = vadd.f32 %v731_v50, %v666_v45 }
 0x1ad   : > { %v522_v52 = vpop.f32.mrf.mxu1 }
 0x1ae   : > { %553 = vst [vmem:[%s262_s9 + $0x18] sm:$0xff] %v531_v51  ;;  %v523_v53 = vadd.f32 %v666_v45, %v522_v52 }
 0x1af   : > { %v734_v54 = vpop.f32.mrf.mxu1 }
 0x1b0   : > { %551 = vst [vmem:[%s262_s9 + $0x8] sm:$0xff] %v523_v53  ;;  %v544_v55 = vadd.f32 %v734_v54, %v666_v45 }
 0x1b1   : > { %v535_v56 = vpop.f32.mrf.mxu1 }
 0x1b2   : > { %556 = vst [vmem:[%s262_s9 + $0x30] sm:$0xff] %v544_v55  ;;  %v536_v57 = vadd.f32 %v666_v45, %v535_v56 }
 0x1b3   : > { %v735_v58 = vpop.f32.mrf.mxu1 }
 0x1b4   : > { %554 = vst [vmem:[%s262_s9 + $0x20] sm:$0xff] %v536_v57  ;;  %v547_v59 = vadd.f32 %v735_v58, %v666_v45 }
 0x1b5   : > { %v538_v60 = vpop.f32.mrf.mxu1 }
 0x1b6   : > { %557 = vst [vmem:[%s262_s9 + $0x38] sm:$0xff] %v547_v59  ;;  %v539_v61 = vadd.f32 %v666_v45, %v538_v60 }
 0x1b8   : > { %555 = vst [vmem:[%s262_s9 + $0x28] sm:$0xff] %v539_v61 }
 0x1b9 PF: > { %s15_s20 = sadd.s32 1, %s798_s20   ;;  %s916_s18 = smov %s794_s19 }
 0x1ba   : > { %p12_p5 = scmp.ge.s32.totalorder %s15_s20, 4   ;;  %s917_s19 = smov %s919_s21 }
 0x1bc   :  { %14 = sbr.rel (!%p12_p5) target bundleno = 2 (0x2), region = 70 }

</bundles_post_ra>
